<compile_context>
chip_gen: v7x
topology: tpu7x:2x2x1
jax: 0.10.0
libtpu: 0.0.40
codegen_flags: <defaults>
</compile_context>

<pallas_src>
import functools

import jax
import jax.numpy as jnp
from jax.experimental import pallas as pl
from jax.experimental.pallas import tpu as pltpu

LANE = 128
SUBLANE = 8


def _round_up(x, m):
    return (x + m - 1) // m * m


def glove_loss_kernel(ce_ref, oe_ref, sc_ref, out_ref):
    """One batch tile.

    ce_ref, oe_ref : (TB, E)     f32 gathered embeddings (unpadded E)
    sc_ref         : (2, TB)     f32 row 0 = center_bias + outside_bias - coocs
                                      row 1 = weighting (0 for padded rows)
    out_ref        : (1, 1, 128) f32 per-block partial loss (broadcast over lanes)
    """
    # Row-wise inner product: VPU multiply + XLU lane reduce.  Deliberately NOT
    # routed through the MXU (a per-row dot is not an MXU-shaped contraction).
    inner = jnp.sum(ce_ref[...] * oe_ref[...], axis=1)          # (TB,)
    sc = sc_ref[...]                                            # (2, TB)
    diff = inner + sc[0]                                        # (TB,)
    partial = jnp.sum(sc[1] * diff * diff)                      # scalar
    # Lane-dense, unmasked store of the per-block partial (wrapper reads lane 0).
    out_ref[...] = jnp.full(out_ref.shape, partial, dtype=out_ref.dtype)


def init_glove_params(key, voc_size, emb_size):
    k1, k2, k3, k4 = jax.random.split(key, 4)
    # deterministic synthetic parameters (matches nn.Embedding table shapes)
    return {
        "center_embedding":  jax.random.normal(k1, (voc_size, emb_size), jnp.float32),
        "outside_embedding": jax.random.normal(k2, (voc_size, emb_size), jnp.float32),
        "center_bias":       jax.random.normal(k3, (voc_size, 1), jnp.float32),
        "outside_bias":      jax.random.normal(k4, (voc_size, 1), jnp.float32),
    }


@functools.partial(jax.jit, static_argnames=("block_b",))
def glove_forward(params, center, outside, coocs, weighting, *, block_b=8192):
    """center/outside: int (B, 1); coocs/weighting: float (B, 1). Returns scalar loss."""
    c_idx = center.reshape(-1)
    o_idx = outside.reshape(-1)
    B = c_idx.shape[0]

    # ---- glue: embedding gathers (plain JAX, fused into this jit) ----
    # TODO(synk): fuse the gather into the kernel (PrefetchScalarGridSpec +
    # per-row DMA, or whole-table-in-VMEM take for small vocab) to avoid
    # materializing the (B, E) intermediates in HBM; kept as XLA gather here
    # for lowering robustness at E=32.
    ce = params["center_embedding"][c_idx].astype(jnp.float32)    # (B, E)
    oe = params["outside_embedding"][o_idx].astype(jnp.float32)   # (B, E)
    cb = params["center_bias"][c_idx].astype(jnp.float32)         # (B, 1)
    ob = params["outside_bias"][o_idx].astype(jnp.float32)        # (B, 1)
    bias = (cb + ob - coocs.reshape(-1, 1).astype(jnp.float32)).reshape(-1)  # (B,)
    wv = weighting.reshape(-1).astype(jnp.float32)                            # (B,)

    E = ce.shape[1]

    # ---- batch tile selection ----
    # VMEM holds the (tb, E) blocks lane-padded to 128, so each buffer costs
    # tb * round_up(E,128) * 4 bytes.  Cap the double-buffered working set at
    # ~24 MiB (2 streams x 2 buffers x 6 MiB + small (8, tb) scalar buffers)
    # so the 32 MiB scoped limit holds everywhere, including v7x (64 MiB VMEM).
    e_lanes = _round_up(max(E, 1), LANE)
    vmem_cap_tb = max(SUBLANE, (6 * 1024 * 1024) // (e_lanes * 4) // SUBLANE * SUBLANE)
    block_b_eff = max(SUBLANE, min(block_b, vmem_cap_tb))

    b8 = _round_up(B, SUBLANE)
    if b8 <= block_b_eff:
        tb = b8                                      # single block (tb == full dim)
    else:
        nb = -(-B // block_b_eff)                    # balanced block count
        # multi-block: tb sits on the lane axis of the (2, tb) scalar block,
        # so it must be a multiple of 128.
        tb = _round_up(-(-B // nb), LANE)
    b_pad = _round_up(B, tb)
    num_blocks = b_pad // tb

    # Padded batch rows get weighting = 0 so they contribute exactly zero.
    ce_p = jnp.pad(ce, ((0, b_pad - B), (0, 0)))
    oe_p = jnp.pad(oe, ((0, b_pad - B), (0, 0)))
    scalars = jnp.stack([bias, wv], axis=0)                      # (2, B)
    scalars_p = jnp.pad(scalars, ((0, 0), (0, b_pad - B)))       # (2, b_pad)

    partials = pl.pallas_call(
        glove_loss_kernel,
        out_shape=jax.ShapeDtypeStruct((num_blocks, 1, LANE), jnp.float32),
        grid_spec=pltpu.PrefetchScalarGridSpec(
            num_scalar_prefetch=0,
            grid=(num_blocks,),
            in_specs=[
                pl.BlockSpec((tb, E), lambda i: (i, 0)),
                pl.BlockSpec((tb, E), lambda i: (i, 0)),
                pl.BlockSpec((2, tb), lambda i: (0, i)),
            ],
            out_specs=pl.BlockSpec((1, 1, LANE), lambda i: (i, 0, 0)),
        ),
        compiler_params=pltpu.CompilerParams(
            # Independent per-block partials => batch axis shards across both
            # TensorCores on v7x (accumulator design would serialize onto one).
            dimension_semantics=("parallel",),
            # ~16.5 MiB actually requested at tb=8192, E<=128.  (v6e-only
            # option: tb~16384 with ~56 MiB limit; not portable to v7x.)
            vmem_limit_bytes=32 * 1024 * 1024,
        ),
    )(ce_p, oe_p, scalars_p)

    return jnp.sum(partials[:, 0, 0])


def glove_forward_ref(params, center, outside, coocs, weighting):
    c_idx = center.reshape(-1)
    o_idx = outside.reshape(-1)
    ce = params["center_embedding"][c_idx]
    oe = params["outside_embedding"][o_idx]
    cb = params["center_bias"][c_idx]
    ob = params["outside_bias"][o_idx]
    inner = jnp.sum(ce * oe, axis=1, keepdims=True)
    loss = weighting.reshape(-1, 1) * jnp.square(
        inner + cb + ob - coocs.reshape(-1, 1))
    return jnp.sum(loss)


if __name__ == "__main__":
    VOC_SIZE = 50
    EMB_SIZE = 32
    BATCH = 8

    key = jax.random.PRNGKey(0)
    kp, kc, ko, kx, kw = jax.random.split(key, 5)

    params = init_glove_params(kp, VOC_SIZE, EMB_SIZE)

    center = jax.random.randint(kc, (BATCH, 1), 0, VOC_SIZE, dtype=jnp.int32)
    outside = jax.random.randint(ko, (BATCH, 1), 0, VOC_SIZE, dtype=jnp.int32)
    coocs = jax.random.uniform(kx, (BATCH, 1), jnp.float32, 0.0, 5.0)
    weighting = jax.random.uniform(kw, (BATCH, 1), jnp.float32, 0.0, 1.0)

    loss = glove_forward(params, center, outside, coocs, weighting)
    loss = jax.block_until_ready(loss)
    loss_ref = glove_forward_ref(params, center, outside, coocs, weighting)
    assert jnp.allclose(loss, loss_ref, rtol=1e-5, atol=1e-4), (loss, loss_ref)

    # Also exercise the multi-block / padded-batch path (3 blocks of 128).
    B2 = 300
    k2c, k2o, k2x, k2w = jax.random.split(jax.random.PRNGKey(1), 4)
    center2 = jax.random.randint(k2c, (B2, 1), 0, VOC_SIZE, dtype=jnp.int32)
    outside2 = jax.random.randint(k2o, (B2, 1), 0, VOC_SIZE, dtype=jnp.int32)
    coocs2 = jax.random.uniform(k2x, (B2, 1), jnp.float32, 0.0, 5.0)
    weighting2 = jax.random.uniform(k2w, (B2, 1), jnp.float32, 0.0, 1.0)

    loss2 = glove_forward(params, center2, outside2, coocs2, weighting2, block_b=128)
    loss2 = jax.block_until_ready(loss2)
    loss2_ref = glove_forward_ref(params, center2, outside2, coocs2, weighting2)
    assert jnp.allclose(loss2, loss2_ref, rtol=1e-5, atol=1e-3), (loss2, loss2_ref)

    print("KERNEL_OK")
</pallas_src>

<mosaic_0001>
module attributes {stable_mosaic.version = 11 : i64} {
  func.func @glove_loss_kernel(%arg0: i32, %arg1: memref<8x32xf32, #tpu.memory_space<vmem>>, %arg2: memref<8x32xf32, #tpu.memory_space<vmem>>, %arg3: memref<2x8xf32, #tpu.memory_space<vmem>>, %arg4: memref<1x1x128xf32, #tpu.memory_space<vmem>>) attributes {dimension_semantics = [#tpu.dimension_semantics<parallel>], iteration_bounds = array<i64: 1>, scalar_prefetch = 0 : i64, scratch_operands = 0 : i64, tpu.core_type = #tpu.core_type<tc>, window_params = [{transform_indices = @transform_0, window_bounds = array<i64: 8, 32>}, {transform_indices = @transform_1, window_bounds = array<i64: 8, 32>}, {transform_indices = @transform_2, window_bounds = array<i64: 2, 8>}, {transform_indices = @transform_3, window_bounds = array<i64: 1, 1, 128>}]} {
    %c0 = arith.constant 0 : index
    %c0_0 = arith.constant 0 : index
    %0 = vector.load %arg1[%c0, %c0_0] : memref<8x32xf32, #tpu.memory_space<vmem>>, vector<8x32xf32>
    %c0_1 = arith.constant 0 : index
    %c0_2 = arith.constant 0 : index
    %1 = vector.load %arg2[%c0_1, %c0_2] : memref<8x32xf32, #tpu.memory_space<vmem>>, vector<8x32xf32>
    %2 = arith.mulf %0, %1 : vector<8x32xf32>
    %cst = arith.constant dense<0.000000e+00> : vector<8xf32>
    %3 = vector.multi_reduction <add>, %2, %cst [1] : vector<8x32xf32> to vector<8xf32>
    %c0_3 = arith.constant 0 : index
    %c0_4 = arith.constant 0 : index
    %4 = vector.load %arg3[%c0_3, %c0_4] : memref<2x8xf32, #tpu.memory_space<vmem>>, vector<2x8xf32>
    %5 = vector.extract_strided_slice %4 {offsets = [0, 0], sizes = [1, 8], strides = [1, 1]} : vector<2x8xf32> to vector<1x8xf32>
    %6 = vector.shape_cast %5 : vector<1x8xf32> to vector<8xf32>
    %7 = arith.addf %3, %6 : vector<8xf32>
    %8 = vector.extract_strided_slice %4 {offsets = [1, 0], sizes = [1, 8], strides = [1, 1]} : vector<2x8xf32> to vector<1x8xf32>
    %9 = vector.shape_cast %8 : vector<1x8xf32> to vector<8xf32>
    %10 = arith.mulf %9, %7 : vector<8xf32>
    %11 = arith.mulf %10, %7 : vector<8xf32>
    %12 = vector.shape_cast %11 : vector<8xf32> to vector<1x8xf32>
    %cst_5 = arith.constant dense<0.000000e+00> : vector<1xf32>
    %13 = vector.multi_reduction <add>, %12, %cst_5 [1] : vector<1x8xf32> to vector<1xf32>
    %14 = vector.shape_cast %13 : vector<1xf32> to vector<1x1xf32>
    %15 = vector.extract %14[0, 0] : f32 from vector<1x1xf32>
    %16 = vector.broadcast %15 : f32 to vector<1x1x128xf32>
    %c0_6 = arith.constant 0 : index
    %c0_7 = arith.constant 0 : index
    %c0_8 = arith.constant 0 : index
    %17 = vector.load %arg4[%c0_6, %c0_7, %c0_8] : memref<1x1x128xf32, #tpu.memory_space<vmem>>, vector<1x1x128xf32>
    tpu.vector_store %arg4[%c0_6, %c0_7, %c0_8], %16 {strides = array<i32>} : memref<1x1x128xf32, #tpu.memory_space<vmem>>, vector<1x1x128xf32>,
    return
  }
  func.func @transform_0(%arg0: i32) -> (i32, i32) {
    %c0_i32 = arith.constant 0 : i32
    %c0_i32_0 = arith.constant 0 : i32
    return %arg0, %c0_i32 : i32, i32
  }
  func.func @transform_1(%arg0: i32) -> (i32, i32) {
    %c0_i32 = arith.constant 0 : i32
    %c0_i32_0 = arith.constant 0 : i32
    return %arg0, %c0_i32 : i32, i32
  }
  func.func @transform_2(%arg0: i32) -> (i32, i32) {
    %c0_i32 = arith.constant 0 : i32
    %c0_i32_0 = arith.constant 0 : i32
    return %c0_i32, %arg0 : i32, i32
  }
  func.func @transform_3(%arg0: i32) -> (i32, i32, i32) {
    %c0_i32 = arith.constant 0 : i32
    %c0_i32_0 = arith.constant 0 : i32
    %c0_i32_1 = arith.constant 0 : i32
    return %arg0, %c0_i32, %c0_i32_0 : i32, i32, i32
  }
}

</mosaic_0001>

<bundles_post_ra>
// kernel: glove_forward.1
= control target key start
LH: loop header
LB: loop body
LE: loop exit
PB: predicated region body
PF: predicated region fallthrough
CT: control target
= control target key end

     0   :  { %vm18_vm0 = vcmask 261120   ;;  %s143_s0 = inlined_call_operand.vmem [shape: f32[8,32], index: 0, kind: input, shape index: {}]   ;;  %s144_s1 = inlined_call_operand.vmem [shape: f32[8,32], index: 1, kind: input, shape index: {}]   ;;  %s145_s2 = inlined_call_operand.vmem [shape: f32[2,8], index: 2, kind: input, shape index: {}]   ;;  %s146_s3 = inlined_call_operand.hbm [shape: f32[1,1,128], index: 3, kind: output, shape index: {}]  }
   0x1   :  { %v15_v0 = vld [vmem:[%s143_s0] sm:$0xff] }
   0x2   :  { %v16_v1 = vld [vmem:[%s144_s1] sm:$0xff] }
   0x3   :  { %v17_v2 = vmul.f32 %v16_v1, %v15_v0 }
   0x4   :  { %8 = vsyncpa [#allocation3], 0  ;;  %v24_v4 = vlaneseq  ;;  %v22_v7 = vld [vmem:[%s145_s2] sm:$0x3]  ;;  %v100_v9 = vmov 0   ;;  %vm46_vm1 = vcmask 58369  }
   0x5   :  { %v19_v3 = vsel %vm18_vm0, %v17_v2, 0.0  ;;  %74 = vset.pattern.permute.xlu1 %v100_v9  ;;  %75 = vset.pattern.permute.xlu0 %v100_v9  ;;  %s101_s0 = smov [#allocation2]  }
   0x6   :  { %20 = vadd.xlane.f32.xlu0 %v19_v3  ;;  %v25_v5 = vshrl.u32 %v24_v4, 7  ;;  %v38_v10 = vand.u32 127, %v24_v4  ;;  %s62_s1 = sshll.u32 %s101_s0, 4  ;;  %s63_s1 = int_to_ptr.vmem [resolvable:$true] %s62_s1 }
   0x7   :  { %s76_s18 = scalar_lea.vmem %s63_s1, 16  ;;  %s80_s19 = scalar_lea.vmem %s63_s1, 32 }
   0x8   :  { %v26_v6 = vsub.s32 0, %v25_v5  ;;  %v41_v11 = vsub.s32 %v38_v10, %v25_v5  ;;  %p77_p0 = scmp.ne.s32.totalorder %s63_s1, %s76_s18  ;;  %p81_p1 = scmp.lt.s32.totalorder %s63_s1, %s63_s1 }
   0x9   :  { %p82_p2 = scmp.lt.s32.totalorder %s80_s19, %s76_s18 }
   0xa   :  { %v27_v8 = vrot.slane %v22_v7, %v26_v6 }
   0xb   :  { %p83_p3 = por %p82_p2, %p81_p1 }
   0xd   :  { %p84_p4 = pnand %p83_p3, %p77_p0 }
  0x1c   :  { %29 = vbcast.lane.b32.xlu0 %v27_v8, 256 }
  0x93   :  { %v21_v12 = vpop.xlane.xlu0 %20 }
  0x97   :  { %v30_v13 = vpop.permute.xlu0 %29 }
  0x98   :  { %v32_v14 = vadd.f32 %v30_v13, %v21_v12 }
  0x9a   :  { %35 = vperm.xlu1 %74, %v32_v14  }
 0x119   :  { %v36_v15 = vpop.permute.xlu1 %35 }
 0x11a   :  { %v42_v16 = vrot.slane %v36_v15, %v41_v11 }
 0x11c   :  { %v44_v17 = vmul.f32 %v42_v16, %v22_v7 }
 0x11e   :  { %v45_v18 = vmul.f32 %v44_v17, %v42_v16 }
 0x120   :  { %v47_v19 = vsel %vm46_vm1, %v45_v18, 0.0 }
 0x121   :  { %48 = vadd.xlane.f32.xlu1 %v47_v19 }
 0x1ae   :  { %v49_v20 = vpop.xlane.xlu1 %48 }
 0x1af   :  { %v51_v21 = vrot.slane %v49_v20, 1 }
 0x1b1   :  { %70 = vpush %v51_v21 }
 0x1e2   :  { %s71_s2 = spop %70 }
 0x1e3   :  { %v54_v22 = vstv %s71_s2 }
 0x1e4   :  { %55 = vst [vmem:[#allocation2] sm:$0x1] %v54_v22 }
 0x1e5   :  { %87 = shalt.err (!%p84_p4)
}
 0x1e6   :  { %s88_s22 = scalar_lea.hbm %s146_s3, 16 }
 0x1e7   :  { %p89_p5 = scmp.ne.s32.totalorder %s146_s3, %s88_s22  ;;  %p92_p6 = scmp.lt.u32.totalorder %s88_s22, %s146_s3 }
 0x1e9   :  { %p94_p7 = pnand %p92_p6, %p89_p5 }
 0x1eb   :  { %97 = shalt.err (!%p94_p7)
}
 0x1ec   :  { %65 = dma.vmem_to_hbm [thread:$0]  %s63_s1, 16, %s146_s3, [#allocation3]  }
 0x1ed   :  { %98 = dma.done.wait [#allocation3], 16  }
 0x1ee   :  { %99 = vsyncadd [#allocation3], 4294967280 }
 0x1ef   :  { %69 = vsyncpa [#allocation3], 1 }

</bundles_post_ra>
